<compile_context>
chip_gen: v7x
topology: tpu7x:2x2x1
jax: 0.10.0
libtpu: 0.0.40
codegen_flags: <defaults>
</compile_context>

<pallas_src>
import jax
import jax.numpy as jnp
from jax.experimental import pallas as pl
from jax.experimental.pallas import tpu as pltpu


def _round_up(x, m):
    return (x + m - 1) // m * m


def _mlp_kernel(d_ref, m_ref, w1d_ref, w1m_ref, b1_ref, w2_ref, b2_ref,
                w3_ref, b3_ref, o_ref):
    """Fused 3-layer MLP tile: (data, mask) -> relu -> relu -> sigmoid.

    Weights arrive already in the matmul dtype (bf16 or f32); all
    accumulation and the bias/relu/sigmoid epilogue stay in f32.
    """
    # Layer 1: torch.cat folded into two matmuls sharing one f32 accumulator
    # (d @ W1[:dim] + m @ W1[dim:]).
    h1 = jnp.dot(d_ref[...], w1d_ref[...], preferred_element_type=jnp.float32)
    h1 = h1 + jnp.dot(m_ref[...], w1m_ref[...],
                      preferred_element_type=jnp.float32)
    h1 = jnp.maximum(h1 + b1_ref[...], 0.0)                  # [bt, h1_p] f32

    # Layer 2.
    w2 = w2_ref[...]
    h2 = jnp.dot(h1.astype(w2.dtype), w2, preferred_element_type=jnp.float32)
    h2 = jnp.maximum(h2 + b2_ref[...], 0.0)                  # [bt, h2_p] f32

    # Layer 3 + sigmoid (EUP path, f32).
    w3 = w3_ref[...]
    logits = jnp.dot(h2.astype(w3.dtype), w3,
                     preferred_element_type=jnp.float32)
    o_ref[...] = jax.nn.sigmoid(logits + b3_ref[...]).astype(o_ref.dtype)


def prepare_params(params, *, use_bf16=True):
    """Pad / split / cast the GAIN generator weights once (call outside the step).

    - W1 is split into its data-half and mask-half (concat folded into two
      matmuls inside the kernel).
    - Hidden (lane) dims are zero-padded to multiples of 128; the feature dim
      `dim` is left unpadded (activation blocks use the full array dim).
    - Matmul operands stored in bf16 when use_bf16 (else f32); biases stay f32.
    """
    mm_dtype = jnp.bfloat16 if use_bf16 else jnp.float32
    w1 = jnp.asarray(params["G_W1"], jnp.float32)
    b1 = jnp.asarray(params["G_b1"], jnp.float32)
    w2 = jnp.asarray(params["G_W2"], jnp.float32)
    b2 = jnp.asarray(params["G_b2"], jnp.float32)
    w3 = jnp.asarray(params["G_W3"], jnp.float32)
    b3 = jnp.asarray(params["G_b3"], jnp.float32)

    dim = w3.shape[1]
    h1, h2 = w1.shape[1], w2.shape[1]
    h1_p, h2_p = _round_up(h1, 128), _round_up(h2, 128)

    def pad2(a, rows, cols):
        return jnp.pad(a, ((0, rows - a.shape[0]), (0, cols - a.shape[1])))

    return {
        "w1d": pad2(w1[:dim, :], dim, h1_p).astype(mm_dtype),
        "w1m": pad2(w1[dim:, :], dim, h1_p).astype(mm_dtype),
        "b1": pad2(b1.reshape(1, h1), 1, h1_p),
        "w2": pad2(w2, h1_p, h2_p).astype(mm_dtype),
        "b2": pad2(b2.reshape(1, h2), 1, h2_p),
        "w3": pad2(w3, h2_p, dim).astype(mm_dtype),
        "b3": b3.reshape(1, dim),
    }


def _forward_impl(data, mask, prepped, batch_tile):
    w1d, w1m, b1 = prepped["w1d"], prepped["w1m"], prepped["b1"]
    w2, b2 = prepped["w2"], prepped["b2"]
    w3, b3 = prepped["w3"], prepped["b3"]
    mm_dtype = w2.dtype

    B, dim = data.shape
    h1_p, h2_p = w2.shape[0], w3.shape[0]

    # ---- batch tile sizing (static shape logic) -----------------------------
    B8 = _round_up(max(B, 8), 8)
    if B8 <= batch_tile:
        n_tiles, bt = 1, B8
    else:
        n_tiles = pl.cdiv(B8, batch_tile)
        if n_tiles % 2:
            n_tiles += 1          # even tile count -> balanced on v7x's 2 TCs
        bt = _round_up(pl.cdiv(B8, n_tiles), 8)
    B_pad = bt * n_tiles

    # Cast + pad the activation streams once (fused by jit). Padded rows give
    # sigmoid(bias) garbage but are sliced off below; they never contaminate
    # real rows.
    data_p = jnp.pad(data.astype(mm_dtype), ((0, B_pad - B), (0, 0)))
    mask_p = jnp.pad(mask.astype(mm_dtype), ((0, B_pad - B), (0, 0)))

    # Resident (non-tiled) operand: same whole-array block at every grid step.
    def resident(arr):
        return pl.BlockSpec(arr.shape, lambda i: (0, 0))

    act_bytes = (data_p.size + mask_p.size) * data_p.dtype.itemsize
    out_bytes = B_pad * dim * 4
    wgt_bytes = sum(int(prepped[k].size) * prepped[k].dtype.itemsize
                    for k in ("w1d", "w1m", "b1", "w2", "b2", "w3", "b3"))
    cost = pl.CostEstimate(
        flops=int(2 * B_pad * (2 * dim * h1_p + h1_p * h2_p + h2_p * dim)),
        transcendentals=int(B_pad * dim),
        bytes_accessed=int(act_bytes + out_bytes + wgt_bytes),
    )

    out_p = pl.pallas_call(
        _mlp_kernel,
        out_shape=jax.ShapeDtypeStruct((B_pad, dim), jnp.float32),
        grid_spec=pl.GridSpec(
            grid=(n_tiles,),
            in_specs=[
                pl.BlockSpec((bt, dim), lambda i: (i, 0)),   # data tile
                pl.BlockSpec((bt, dim), lambda i: (i, 0)),   # mask tile
                resident(w1d),                               # W1[:dim]
                resident(w1m),                               # W1[dim:]
                resident(b1),                                # b1
                resident(w2),                                # W2
                resident(b2),                                # b2
                resident(w3),                                # W3
                resident(b3),                                # b3
            ],
            out_specs=pl.BlockSpec((bt, dim), lambda i: (i, 0)),
        ),
        compiler_params=pltpu.CompilerParams(
            dimension_semantics=("parallel",),
        ),
        cost_estimate=cost,
    )(data_p, mask_p, w1d, w1m, b1, w2, b2, w3, b3)

    return out_p[:B, :]


_forward_jit = jax.jit(_forward_impl, static_argnums=(3,))


def imputation_forward(data, mask, prepped, *, batch_tile=1024):
    """data, mask: [B, dim]; prepped: output of prepare_params()."""
    return _forward_jit(jnp.asarray(data), jnp.asarray(mask), prepped,
                        int(batch_tile))


# ----------------------------- reference / test ------------------------------

def xavier_init(key, shape):
    # Matches GAIN's xavier_init: normal with stddev = 1/sqrt(fan_in/2).
    stddev = 1.0 / jnp.sqrt(shape[0] / 2.0)
    return stddev * jax.random.normal(key, shape, dtype=jnp.float32)


def init_params(key, dim, hidden_dim1, hidden_dim2):
    k1, k2, k3 = jax.random.split(key, 3)
    return {
        "G_W1": xavier_init(k1, (dim * 2, hidden_dim1)),
        "G_b1": jnp.zeros((hidden_dim1,), jnp.float32),
        "G_W2": xavier_init(k2, (hidden_dim1, hidden_dim2)),
        "G_b2": jnp.zeros((hidden_dim2,), jnp.float32),
        "G_W3": xavier_init(k3, (hidden_dim2, dim)),
        "G_b3": jnp.zeros((dim,), jnp.float32),
    }


def reference_forward(data, mask, params):
    inputs = jnp.concatenate([data, mask], axis=1).astype(jnp.float32)
    h1 = jax.nn.relu(inputs @ params["G_W1"] + params["G_b1"])
    h2 = jax.nn.relu(h1 @ params["G_W2"] + params["G_b2"])
    return jax.nn.sigmoid(h2 @ params["G_W3"] + params["G_b3"])


if __name__ == "__main__":
    dim, hidden_dim1, hidden_dim2 = 16, 32, 32
    batch = 8

    key = jax.random.PRNGKey(0)
    k_params, k_data, k_mask = jax.random.split(key, 3)

    params = init_params(k_params, dim, hidden_dim1, hidden_dim2)
    data = jax.random.uniform(k_data, (batch, dim), dtype=jnp.float32)
    mask = (jax.random.uniform(k_mask, (batch, dim)) > 0.3).astype(jnp.float32)
    ref = reference_forward(data, mask, params)

    # --- exact path (f32 matmul operands) vs. reference ----------------------
    prepped_f32 = prepare_params(params, use_bf16=False)
    out = jax.block_until_ready(imputation_forward(data, mask, prepped_f32))
    assert out.shape == (batch, dim)
    assert jnp.allclose(out, ref, atol=1e-5, rtol=1e-5)

    # --- default fast path (bf16 matmul operands, f32 accumulate/epilogue) ---
    prepped_bf16 = prepare_params(params)  # use_bf16=True
    out_bf = jax.block_until_ready(imputation_forward(data, mask, prepped_bf16))
    assert out_bf.shape == (batch, dim)
    assert jnp.allclose(out_bf, ref, atol=2e-2, rtol=2e-2)

    # --- multi-tile grid path (even tile count + batch padding) --------------
    k_d2, k_m2 = jax.random.split(jax.random.PRNGKey(1))
    big_b = 600  # with batch_tile=128 -> 6 tiles of 104 rows (624 padded rows)
    data2 = jax.random.uniform(k_d2, (big_b, dim), dtype=jnp.float32)
    mask2 = (jax.random.uniform(k_m2, (big_b, dim)) > 0.3).astype(jnp.float32)
    out2 = jax.block_until_ready(
        imputation_forward(data2, mask2, prepped_f32, batch_tile=128))
    ref2 = reference_forward(data2, mask2, params)
    assert out2.shape == (big_b, dim)
    assert jnp.allclose(out2, ref2, atol=1e-5, rtol=1e-5)

    print("KERNEL_OK")
</pallas_src>

<mosaic_0001>
module attributes {stable_mosaic.version = 11 : i64} {
  func.func @_mlp_kernel(%arg0: i32, %arg1: memref<8x16xf32, #tpu.memory_space<vmem>>, %arg2: memref<8x16xf32, #tpu.memory_space<vmem>>, %arg3: memref<16x128xf32, #tpu.memory_space<vmem>>, %arg4: memref<16x128xf32, #tpu.memory_space<vmem>>, %arg5: memref<1x128xf32, #tpu.memory_space<vmem>>, %arg6: memref<128x128xf32, #tpu.memory_space<vmem>>, %arg7: memref<1x128xf32, #tpu.memory_space<vmem>>, %arg8: memref<128x16xf32, #tpu.memory_space<vmem>>, %arg9: memref<1x16xf32, #tpu.memory_space<vmem>>, %arg10: memref<8x16xf32, #tpu.memory_space<vmem>>) attributes {dimension_semantics = [#tpu.dimension_semantics<parallel>], iteration_bounds = array<i64: 1>, scalar_prefetch = 0 : i64, scratch_operands = 0 : i64, tpu.core_type = #tpu.core_type<tc>, window_params = [{transform_indices = @transform_0, window_bounds = array<i64: 8, 16>}, {transform_indices = @transform_1, window_bounds = array<i64: 8, 16>}, {pipeline_mode = #tpu.pipeline_mode<synchronous>, transform_indices = @transform_2, window_bounds = array<i64: 16, 128>}, {pipeline_mode = #tpu.pipeline_mode<synchronous>, transform_indices = @transform_3, window_bounds = array<i64: 16, 128>}, {pipeline_mode = #tpu.pipeline_mode<synchronous>, transform_indices = @transform_4, window_bounds = array<i64: 1, 128>}, {pipeline_mode = #tpu.pipeline_mode<synchronous>, transform_indices = @transform_5, window_bounds = array<i64: 128, 128>}, {pipeline_mode = #tpu.pipeline_mode<synchronous>, transform_indices = @transform_6, window_bounds = array<i64: 1, 128>}, {pipeline_mode = #tpu.pipeline_mode<synchronous>, transform_indices = @transform_7, window_bounds = array<i64: 128, 16>}, {pipeline_mode = #tpu.pipeline_mode<synchronous>, transform_indices = @transform_8, window_bounds = array<i64: 1, 16>}, {transform_indices = @transform_9, window_bounds = array<i64: 8, 16>}]} {
    %c0 = arith.constant 0 : index
    %c0_0 = arith.constant 0 : index
    %0 = vector.load %arg1[%c0, %c0_0] : memref<8x16xf32, #tpu.memory_space<vmem>>, vector<8x16xf32>
    %c0_1 = arith.constant 0 : index
    %c0_2 = arith.constant 0 : index
    %1 = vector.load %arg3[%c0_1, %c0_2] : memref<16x128xf32, #tpu.memory_space<vmem>>, vector<16x128xf32>
    %cst = arith.constant dense<0.000000e+00> : vector<8x128xf32>
    %2 = tpu.matmul %0, %1, %cst {dimension_numbers = #tpu.dot_dimension_numbers<[1], [0], [0], [1], [0, 0, 1, 1], [], []>} : vector<8x16xf32>, vector<16x128xf32>, vector<8x128xf32> -> vector<8x128xf32>
    %c0_3 = arith.constant 0 : index
    %c0_4 = arith.constant 0 : index
    %3 = vector.load %arg2[%c0_3, %c0_4] : memref<8x16xf32, #tpu.memory_space<vmem>>, vector<8x16xf32>
    %c0_5 = arith.constant 0 : index
    %c0_6 = arith.constant 0 : index
    %4 = vector.load %arg4[%c0_5, %c0_6] : memref<16x128xf32, #tpu.memory_space<vmem>>, vector<16x128xf32>
    %cst_7 = arith.constant dense<0.000000e+00> : vector<8x128xf32>
    %5 = tpu.matmul %3, %4, %cst_7 {dimension_numbers = #tpu.dot_dimension_numbers<[1], [0], [0], [1], [0, 0, 1, 1], [], []>} : vector<8x16xf32>, vector<16x128xf32>, vector<8x128xf32> -> vector<8x128xf32>
    %6 = arith.addf %2, %5 : vector<8x128xf32>
    %c0_8 = arith.constant 0 : index
    %c0_9 = arith.constant 0 : index
    %7 = vector.load %arg5[%c0_8, %c0_9] : memref<1x128xf32, #tpu.memory_space<vmem>>, vector<1x128xf32>
    %8 = vector.broadcast %7 : vector<1x128xf32> to vector<8x128xf32>
    %9 = arith.addf %6, %8 : vector<8x128xf32>
    %cst_10 = arith.constant 0.000000e+00 : f32
    %10 = vector.broadcast %cst_10 : f32 to vector<8x128xf32>
    %11 = arith.maximumf %9, %10 : vector<8x128xf32>
    %c0_11 = arith.constant 0 : index
    %c0_12 = arith.constant 0 : index
    %12 = vector.load %arg6[%c0_11, %c0_12] : memref<128x128xf32, #tpu.memory_space<vmem>>, vector<128x128xf32>
    %cst_13 = arith.constant dense<0.000000e+00> : vector<8x128xf32>
    %13 = tpu.matmul %11, %12, %cst_13 {dimension_numbers = #tpu.dot_dimension_numbers<[1], [0], [0], [1], [0, 0, 1, 1], [], []>} : vector<8x128xf32>, vector<128x128xf32>, vector<8x128xf32> -> vector<8x128xf32>
    %c0_14 = arith.constant 0 : index
    %c0_15 = arith.constant 0 : index
    %14 = vector.load %arg7[%c0_14, %c0_15] : memref<1x128xf32, #tpu.memory_space<vmem>>, vector<1x128xf32>
    %15 = vector.broadcast %14 : vector<1x128xf32> to vector<8x128xf32>
    %16 = arith.addf %13, %15 : vector<8x128xf32>
    %cst_16 = arith.constant 0.000000e+00 : f32
    %17 = vector.broadcast %cst_16 : f32 to vector<8x128xf32>
    %18 = arith.maximumf %16, %17 : vector<8x128xf32>
    %c0_17 = arith.constant 0 : index
    %c0_18 = arith.constant 0 : index
    %19 = vector.load %arg8[%c0_17, %c0_18] : memref<128x16xf32, #tpu.memory_space<vmem>>, vector<128x16xf32>
    %cst_19 = arith.constant dense<0.000000e+00> : vector<8x16xf32>
    %20 = tpu.matmul %18, %19, %cst_19 {dimension_numbers = #tpu.dot_dimension_numbers<[1], [0], [0], [1], [0, 0, 1, 1], [], []>} : vector<8x128xf32>, vector<128x16xf32>, vector<8x16xf32> -> vector<8x16xf32>
    %c0_20 = arith.constant 0 : index
    %c0_21 = arith.constant 0 : index
    %21 = vector.load %arg9[%c0_20, %c0_21] : memref<1x16xf32, #tpu.memory_space<vmem>>, vector<1x16xf32>
    %22 = vector.broadcast %21 : vector<1x16xf32> to vector<8x16xf32>
    %23 = arith.addf %20, %22 : vector<8x16xf32>
    %24 = arith.negf %23 : vector<8x16xf32>
    %25 = math.exp %24 : vector<8x16xf32>
    %cst_22 = arith.constant 1.000000e+00 : f32
    %26 = vector.broadcast %cst_22 : f32 to vector<8x16xf32>
    %27 = arith.addf %26, %25 : vector<8x16xf32>
    %28 = arith.divf %26, %27 : vector<8x16xf32>
    %c0_23 = arith.constant 0 : index
    %c0_24 = arith.constant 0 : index
    %29 = vector.load %arg10[%c0_23, %c0_24] : memref<8x16xf32, #tpu.memory_space<vmem>>, vector<8x16xf32>
    tpu.vector_store %arg10[%c0_23, %c0_24], %28 {strides = array<i32>} : memref<8x16xf32, #tpu.memory_space<vmem>>, vector<8x16xf32>,
    return
  }
  func.func @transform_0(%arg0: i32) -> (i32, i32) {
    %c0_i32 = arith.constant 0 : i32
    %c0_i32_0 = arith.constant 0 : i32
    return %arg0, %c0_i32 : i32, i32
  }
  func.func @transform_1(%arg0: i32) -> (i32, i32) {
    %c0_i32 = arith.constant 0 : i32
    %c0_i32_0 = arith.constant 0 : i32
    return %arg0, %c0_i32 : i32, i32
  }
  func.func @transform_2(%arg0: i32) -> (i32, i32) {
    %c0_i32 = arith.constant 0 : i32
    %c0_i32_0 = arith.constant 0 : i32
    %c0_i32_1 = arith.constant 0 : i32
    return %c0_i32, %c0_i32_0 : i32, i32
  }
  func.func @transform_3(%arg0: i32) -> (i32, i32) {
    %c0_i32 = arith.constant 0 : i32
    %c0_i32_0 = arith.constant 0 : i32
    %c0_i32_1 = arith.constant 0 : i32
    return %c0_i32, %c0_i32_0 : i32, i32
  }
  func.func @transform_4(%arg0: i32) -> (i32, i32) {
    %c0_i32 = arith.constant 0 : i32
    %c0_i32_0 = arith.constant 0 : i32
    %c0_i32_1 = arith.constant 0 : i32
    return %c0_i32, %c0_i32_0 : i32, i32
  }
  func.func @transform_5(%arg0: i32) -> (i32, i32) {
    %c0_i32 = arith.constant 0 : i32
    %c0_i32_0 = arith.constant 0 : i32
    %c0_i32_1 = arith.constant 0 : i32
    return %c0_i32, %c0_i32_0 : i32, i32
  }
  func.func @transform_6(%arg0: i32) -> (i32, i32) {
    %c0_i32 = arith.constant 0 : i32
    %c0_i32_0 = arith.constant 0 : i32
    %c0_i32_1 = arith.constant 0 : i32
    return %c0_i32, %c0_i32_0 : i32, i32
  }
  func.func @transform_7(%arg0: i32) -> (i32, i32) {
    %c0_i32 = arith.constant 0 : i32
    %c0_i32_0 = arith.constant 0 : i32
    %c0_i32_1 = arith.constant 0 : i32
    return %c0_i32, %c0_i32_0 : i32, i32
  }
  func.func @transform_8(%arg0: i32) -> (i32, i32) {
    %c0_i32 = arith.constant 0 : i32
    %c0_i32_0 = arith.constant 0 : i32
    %c0_i32_1 = arith.constant 0 : i32
    return %c0_i32, %c0_i32_0 : i32, i32
  }
  func.func @transform_9(%arg0: i32) -> (i32, i32) {
    %c0_i32 = arith.constant 0 : i32
    %c0_i32_0 = arith.constant 0 : i32
    return %arg0, %c0_i32 : i32, i32
  }
}

</mosaic_0001>

<bundles_post_ra>
// kernel: _forward_impl.1
= control target key start
LH: loop header
LB: loop body
LE: loop exit
PB: predicated region body
PF: predicated region fallthrough
CT: control target
= control target key end

     0   :  { %14 = vsyncpa [#allocation3], 0  ;;  %s939_s0 = inlined_call_operand.vmem [shape: f32[8,16], index: 0, kind: input, shape index: {}]   ;;  %s940_s1 = inlined_call_operand.hbm [shape: f32[8,16], index: 1, kind: input, shape index: {}]   ;;  %s941_s2 = inlined_call_operand.vmem [shape: f32[16,128], index: 2, kind: input, shape index: {}]   ;;  %s942_s3 = inlined_call_operand.hbm [shape: f32[16,128], index: 3, kind: input, shape index: {}]   ;;  %s943_s4 = inlined_call_operand.vmem [shape: f32[1,128], index: 4, kind: input, shape index: {}]   ;;  %s944_s5 = inlined_call_operand.vmem [shape: f32[128,128], index: 5, kind: input, shape index: {}]   ;;  %s945_s6 = inlined_call_operand.vmem [shape: f32[1,128], index: 6, kind: input, shape index: {}]   ;;  %s946_s7 = inlined_call_operand.vmem [shape: f32[128,16], index: 7, kind: input, shape index: {}]   ;;  %s947_s8 = inlined_call_operand.vmem [shape: f32[1,16], index: 8, kind: input, shape index: {}]   ;;  %s948_s9 = inlined_call_operand.hbm [shape: f32[8,16], index: 9, kind: output, shape index: {}]  }
   0x1   :  { %15 = vsyncpa [#allocation6], 0 }
   0x2   :  { %16 = vsyncpa [#allocation4], 0  ;;  %s699_s30 = smov [#allocation2]   ;;  %s700_s11 = smov [#allocation5]  }
   0x3   :  { %s25_s10 = sshll.u32 %s699_s30, 4  ;;  %s36_s12 = sshll.u32 %s700_s11, 4  ;;  %s26_s10 = int_to_ptr.vmem [resolvable:$true] %s25_s10  ;;  %s757_s12 = int_to_ptr.vmem [resolvable:$true] %s36_s12 }
   0x4   :  { %s627_s15 = scalar_lea.hbm %s940_s1, 128 }
   0x5   :  { %p628_p0 = scmp.ne.s32.totalorder %s940_s1, %s627_s15  ;;  %p631_p1 = scmp.lt.u32.totalorder %s627_s15, %s940_s1 }
   0x7   :  { %p633_p2 = pnand %p631_p1, %p628_p0 }
   0x9   :  { %636 = shalt.err (!%p633_p2)
}
   0xa   :  { %s637_s20 = scalar_lea.vmem %s26_s10, 128  ;;  %p642_p4 = scmp.lt.s32.totalorder %s26_s10, %s26_s10 }
   0xb   :  { %p638_p3 = scmp.ne.s32.totalorder %s26_s10, %s637_s20  ;;  %p643_p5 = scmp.lt.s32.totalorder %s637_s20, %s637_s20 }
   0xd   :  { %p644_p6 = por %p643_p5, %p642_p4 }
   0xf   :  { %p645_p7 = pnand %p644_p6, %p638_p3 }
  0x11   :  { %648 = shalt.err (!%p645_p7)
}
  0x12   :  { %28 = dma.hbm_to_vmem [thread:$0]  %s940_s1, 128, %s26_s10, [#allocation3]  }
  0x13   :  { %s649_s25 = scalar_lea.hbm %s942_s3, 256 }
  0x14   :  { %p650_p8 = scmp.ne.s32.totalorder %s942_s3, %s649_s25  ;;  %p653_p9 = scmp.lt.u32.totalorder %s649_s25, %s942_s3 }
  0x16   :  { %p655_p10 = pnand %p653_p9, %p650_p8 }
  0x18   :  { %658 = shalt.err (!%p655_p10)
}
  0x19   :  { %s659_s30 = scalar_lea.vmem %s757_s12, 256  ;;  %p664_p12 = scmp.lt.s32.totalorder %s757_s12, %s757_s12 }
  0x1a   :  { %p660_p11 = scmp.ne.s32.totalorder %s757_s12, %s659_s30  ;;  %p665_p13 = scmp.lt.s32.totalorder %s659_s30, %s659_s30 }
  0x1c   :  { %p666_p0 = por %p665_p13, %p664_p12 }
  0x1e   :  { %p667_p1 = pnand %p666_p0, %p660_p11 }
  0x20   :  { %670 = shalt.err (!%p667_p1)
}
  0x21   :  { %s701_s1 = smov 128   ;;  %s702_s10 = smov 8  }
  0x22   :  { %42 = dma.hbm_to_vmem [thread:$0]  %s942_s3, 256, %s757_s12, [#allocation6], %s701_s1, %s701_s1, %s702_s10  }
  0x23   :  { %693 = dma.done.wait [#allocation3], 128  }
  0x24   :  { %694 = vsyncadd [#allocation3], 4294967168 }
  0x25   :  { %695 = dma.done.wait [#allocation6], 256  }
  0x26   :  { %696 = vsyncadd [#allocation6], 4294967040  ;;  %v703_v0 = vmov 0.0|0.0   ;;  %vm704_vm0 = vmmov 0   ;;  %v705_v1 = vmov 0.0   ;;  %v63_v2 = vld [vmem:[#allocation5] sm:$0xff] }
  0x27   :  { %561 = vmatprep.subr.bf16.mxu0 %v703_v0  ;;  %564 = vmatprep.subr.bf16.mxu1 %v703_v0  ;;  %v64_v3 = vld [vmem:[#allocation5 + $0x8] sm:$0xff]  ;;  %v60_v4 = vld [vmem:[%s941_s2] sm:$0xff]  ;;  %v61_v6 = vld [vmem:[%s941_s2 + $0x8] sm:$0xff]  ;;  %vm65_vm1 = vcmask 130048  }
  0x28   :  { %481 = vmatprep.mubr.msk.f32.mxu0 %vm704_vm0, %v705_v1  ;;  %488 = vmatprep.mubr.msk.f32.mxu1 %vm704_vm0, %v705_v1  ;;  %v562_v5 = vpack.c.bf16 %v64_v3, %v63_v2  ;;  %v565_v7 = vpack.c.bf16 %v61_v6, %v60_v4  ;;  %v221_v8 = vld [vmem:[%s944_s5] sm:$0xff]  ;;  %v222_v9 = vld [vmem:[%s944_s5 + $0x8] sm:$0xff]  ;;  %v223_v13 = vld [vmem:[%s944_s5 + $0x10] sm:$0xff] }
  0x29   :  { %v62_v10 = vld [vmem:[#allocation2] sm:$0xff]  ;;  %v568_v11 = vpack.c.bf16 %v222_v9, %v221_v8  ;;  %v224_v14 = vld [vmem:[%s944_s5 + $0x18] sm:$0xff]  ;;  %v226_v17 = vld [vmem:[%s944_s5 + $0x28] sm:$0xff] }
  0x2a   :  { %563 = vmatpush3.bf16.msra.mxu0 %v562_v5  ;;  %566 = vmatpush3.bf16.msra.mxu1 %v565_v7  ;;  %v59_v12 = vld [vmem:[%s939_s0] sm:$0xff]  ;;  %v571_v15 = vpack.c.bf16 %v224_v14, %v223_v13  ;;  %v227_v19 = vld [vmem:[%s944_s5 + $0x30] sm:$0xff]  ;;  %v228_v20 = vld [vmem:[%s944_s5 + $0x38] sm:$0xff] }
  0x2b   :  { %567 = vmatprep.subr.bf16.mxu0 %v703_v0  ;;  %591 = vmatprep.subr.bf16.mxu1 %v703_v0  ;;  %v225_v16 = vld [vmem:[%s944_s5 + $0x20] sm:$0xff]  ;;  %v577_v21 = vpack.c.bf16 %v228_v20, %v227_v19  ;;  %v230_v23 = vld [vmem:[%s944_s5 + $0x48] sm:$0xff]  ;;  %v231_v25 = vld [vmem:[%s944_s5 + $0x50] sm:$0xff] }
  0x2c   :  { %v574_v18 = vpack.c.bf16 %v226_v17, %v225_v16  ;;  %v229_v22 = vld [vmem:[%s944_s5 + $0x40] sm:$0xff]  ;;  %v232_v26 = vld [vmem:[%s944_s5 + $0x58] sm:$0xff]  ;;  %v234_v29 = vld [vmem:[%s944_s5 + $0x68] sm:$0xff] }
  0x2d   :  { %482 = vmatmul.mubr.msk.f32.vlgmr.msra.gmra.mrb[0].mxu0 %vm65_vm1, %v62_v10  ;;  %489 = vmatmul.mubr.msk.f32.vlgmr.msra.gmra.mrb[0].mxu1 %vm65_vm1, %v59_v12  ;;  %v580_v24 = vpack.c.bf16 %v230_v23, %v229_v22  ;;  %v583_v27 = vpack.c.bf16 %v232_v26, %v231_v25  ;;  %v233_v28 = vld [vmem:[%s944_s5 + $0x60] sm:$0xff]  ;;  %v235_v31 = vld [vmem:[%s944_s5 + $0x70] sm:$0xff]  ;;  %v236_v32 = vld [vmem:[%s944_s5 + $0x78] sm:$0xff] }
  0x2e   :  { %569 = vmatpush3.bf16.msra.mxu0 %v568_v11  ;;  %523 = vmatprep.mubr.msk.f32.mxu0 %vm704_vm0, %v705_v1  ;;  %v586_v30 = vpack.c.bf16 %v234_v29, %v233_v28  ;;  %v589_v33 = vpack.c.bf16 %v236_v32, %v235_v31  ;;  %v315_v34 = vld [vmem:[%s946_s7] sm:$0xff]  ;;  %v316_v35 = vld [vmem:[%s946_s7 + $0x8] sm:$0xff]  ;;  %v317_v36 = vld [vmem:[%s946_s7 + $0x10] sm:$0xff] }
  0x2f   :  { %570 = vmatprep.subr.bf16.mxu0 %v703_v0  ;;  %558 = vmatprep.mubr.msk.f32.mxu1 %vm704_vm0, %v705_v1  ;;  %v592_v37 = vpack.c.bf16 %v316_v35, %v315_v34  ;;  %v318_v38 = vld [vmem:[%s946_s7 + $0x18] sm:$0xff]  ;;  %v319_v40 = vld [vmem:[%s946_s7 + $0x20] sm:$0xff]  ;;  %v320_v41 = vld [vmem:[%s946_s7 + $0x28] sm:$0xff] }
  0x30   :  { %v595_v39 = vpack.c.bf16 %v318_v38, %v317_v36  ;;  %v598_v42 = vpack.c.bf16 %v320_v41, %v319_v40  ;;  %v321_v43 = vld [vmem:[%s946_s7 + $0x30] sm:$0xff]  ;;  %v322_v44 = vld [vmem:[%s946_s7 + $0x38] sm:$0xff]  ;;  %v323_v46 = vld [vmem:[%s946_s7 + $0x40] sm:$0xff] }
  0x31   :  { %593 = vmatpush3.bf16.msra.mxu1 %v592_v37  ;;  %v601_v45 = vpack.c.bf16 %v322_v44, %v321_v43  ;;  %v324_v47 = vld [vmem:[%s946_s7 + $0x48] sm:$0xff]  ;;  %v325_v49 = vld [vmem:[%s946_s7 + $0x50] sm:$0xff]  ;;  %v326_v50 = vld [vmem:[%s946_s7 + $0x58] sm:$0xff] }
  0x32   :  { %572 = vmatpush3.bf16.msra.mxu0 %v571_v15  ;;  %594 = vmatprep.subr.bf16.mxu1 %v703_v0  ;;  %v604_v48 = vpack.c.bf16 %v324_v47, %v323_v46  ;;  %v607_v51 = vpack.c.bf16 %v326_v50, %v325_v49  ;;  %v327_v52 = vld [vmem:[%s946_s7 + $0x60] sm:$0xff]  ;;  %v328_v53 = vld [vmem:[%s946_s7 + $0x68] sm:$0xff]  ;;  %v329_v63 = vld [vmem:[%s946_s7 + $0x70] sm:$0xff] }
  0x33   :  { %573 = vmatprep.subr.bf16.mxu0 %v703_v0  ;;  %v610_v54 = vpack.c.bf16 %v328_v53, %v327_v52  ;;  %v433_v57 = vld [vmem:[%s943_s4] ss:$0 sm:$0xff] }
  0x34   :  { %v434_v2 = vld [vmem:[%s945_s6] ss:$0 sm:$0xff] }
  0x35   :  { %596 = vmatpush3.bf16.msra.mxu1 %v595_v39  ;;  %v435_v7 = vld [vmem:[%s947_s8] ss:$0 sm:$0xff] }
  0x36   :  { %575 = vmatpush3.bf16.msra.mxu0 %v574_v18  ;;  %597 = vmatprep.subr.bf16.mxu1 %v703_v0 }
  0x37   :  { %576 = vmatprep.subr.bf16.mxu0 %v703_v0 }
  0x39   :  { %599 = vmatpush3.bf16.msra.mxu1 %v598_v42 }
  0x3a   :  { %578 = vmatpush3.bf16.msra.mxu0 %v577_v21  ;;  %600 = vmatprep.subr.bf16.mxu1 %v703_v0 }
  0x3b   :  { %579 = vmatprep.subr.bf16.mxu0 %v703_v0 }
  0x3d   :  { %602 = vmatpush3.bf16.msra.mxu1 %v601_v45 }
  0x3e   :  { %581 = vmatpush3.bf16.msra.mxu0 %v580_v24  ;;  %603 = vmatprep.subr.bf16.mxu1 %v703_v0 }
  0x3f   :  { %582 = vmatprep.subr.bf16.mxu0 %v703_v0 }
  0x41   :  { %605 = vmatpush3.bf16.msra.mxu1 %v604_v48 }
  0x42   :  { %584 = vmatpush3.bf16.msra.mxu0 %v583_v27  ;;  %606 = vmatprep.subr.bf16.mxu1 %v703_v0 }
  0x43   :  { %585 = vmatprep.subr.bf16.mxu0 %v703_v0 }
  0x45   :  { %608 = vmatpush3.bf16.msra.mxu1 %v607_v51 }
  0x46   :  { %587 = vmatpush3.bf16.msra.mxu0 %v586_v30  ;;  %609 = vmatprep.subr.bf16.mxu1 %v703_v0 }
  0x47   :  { %588 = vmatprep.subr.bf16.mxu0 %v703_v0 }
  0x49   :  { %611 = vmatpush3.bf16.msra.mxu1 %v610_v54 }
  0x4a   :  { %590 = vmatpush3.bf16.msra.mxu0 %v589_v33  ;;  %612 = vmatprep.subr.bf16.mxu1 %v703_v0  ;;  %v330_v0 = vld [vmem:[%s946_s7 + $0x78] sm:$0xff]  ;;  %s706_s7 = smov [#allocation7]  }
  0x4b   :  { %v613_v1 = vpack.c.bf16 %v330_v0, %v329_v63  ;;  %s421_s11 = sshll.u32 %s706_s7, 4  ;;  %s422_s11 = int_to_ptr.vmem [resolvable:$true] %s421_s11 }
  0x4c   :  { %s671_s6 = scalar_lea.vmem %s422_s11, 128  ;;  %p676_p3 = scmp.lt.s32.totalorder %s422_s11, %s422_s11 }
  0x4d   :  { %614 = vmatpush3.bf16.msra.mxu1 %v613_v1  ;;  %p672_p2 = scmp.ne.s32.totalorder %s422_s11, %s671_s6  ;;  %p677_p4 = scmp.lt.s32.totalorder %s671_s6, %s671_s6 }
  0x4f   :  { %p678_p5 = por %p677_p4, %p676_p3 }
  0x51   :  { %p679_p6 = pnand %p678_p5, %p672_p2 }
 0x100   :  { %v135_v55 = vpop.f32.mrb[0].mxu0  ;;  %v208_v56 = vpop.f32.mrb[0].mxu1 }
 0x101   :  { %v483_v58 = vpop.f32.mrb[1].mxu0  ;;  %v209_v59 = vadd.f32 %v208_v56, %v135_v55  ;;  %v490_v60 = vpop.f32.mrb[1].mxu1 }
 0x103   :  { %v219_v61 = vadd.f32 %v433_v57, %v209_v59 }
 0x105   :  { %v220_v62 = vmax.f32 %v219_v61, 0.0 }
 0x107   :  { %524 = vmatmul.mubr.f32.vlgmr.msra.gmra.mrb[2].mxu0 %v220_v62 }
 0x1da   :  { %v310_v3 = vpop.f32.mrb[2].mxu0 }
 0x1db   :  { %v311_v4 = vadd.f32 %v434_v2, %v310_v3  ;;  %v525_v5 = vpop.f32.mrb[3].mxu0 }
 0x1dd   :  { %v314_v6 = vmax.f32 %v311_v4, 0.0 }
 0x1df   :  { %559 = vmatmul.mubr.f32.vlgmr.msra.gmra.mrb[2].mxu1 %v314_v6 }
 0x2b2   :  { %v404_v8 = vpop.f32.mrb[2].mxu1 }
 0x2b3   :  { %v405_v9 = vadd.f32 %v435_v7, %v404_v8  ;;  %v560_v10 = vpop.f32.mrb[3].mxu1 }
 0x2b5   :  { %v436_v11 = vmul.f32 -1.442695, %v405_v9 }
 0x2b7   :  { %623 = vpow2.f32 %v436_v11 }
 0x2c1   :  { %v624_v12 = vpop.eup %623 }
 0x2c2   :  { %v411_v13 = vadd.f32 1.0, %v624_v12 }
 0x2c4   :  { %625 = vrcp.f32 %v411_v13 }
 0x2ce   :  { %v626_v14 = vpop.eup %625 }
 0x2cf   :  { %414 = vst.msk [vmem:[#allocation7] sm:$0xff] %vm65_vm1, %v626_v14 }
 0x2d0   :  { %682 = shalt.err (!%p679_p6)
}
 0x2d1   :  { %s683_s14 = scalar_lea.hbm %s948_s9, 128 }
 0x2d2   :  { %p684_p7 = scmp.ne.s32.totalorder %s948_s9, %s683_s14  ;;  %p687_p8 = scmp.lt.u32.totalorder %s683_s14, %s948_s9 }
 0x2d4   :  { %p689_p9 = pnand %p687_p8, %p684_p7 }
 0x2d6   :  { %692 = shalt.err (!%p689_p9)
}
 0x2d7   :  { %424 = dma.vmem_to_hbm [thread:$0]  %s422_s11, 128, %s948_s9, [#allocation4]  }
 0x2d8   :  { %697 = dma.done.wait [#allocation4], 128  }
 0x2d9   :  { %698 = vsyncadd [#allocation4], 4294967168 }
 0x2da   :  { %428 = vsyncpa [#allocation3], 1 }
 0x2db   :  { %429 = vsyncpa [#allocation6], 1 }
 0x2dc   :  { %430 = vsyncpa [#allocation4], 1 }

</bundles_post_ra>
